<compile_context>
chip_gen: v7x
topology: tpu7x:2x2x1
jax: 0.10.0
libtpu: 0.0.40
codegen_flags: <defaults>
</compile_context>

<pallas_src>
import functools

import jax
import jax.numpy as jnp
from jax import lax
from jax.experimental import pallas as pl
from jax.experimental.pallas import tpu as pltpu

_EPS = 1e-5            # default eps for nn.BatchNorm2d / nn.InstanceNorm2d
_MIB = 1024 * 1024


# ---------------------------------------------------------------------------
# Generation-aware tiling budgets.
# ---------------------------------------------------------------------------
def _tpu_generation():
    try:
        kind = jax.devices()[0].device_kind.lower()
    except Exception:
        return None
    for tag in ("v7", "v6", "v5"):
        if tag in kind:
            return tag
    return None


def _budgets():
    """Per-generation block byte budgets (f32 working-set bytes) + VMEM limit."""
    gen = _tpu_generation()
    if gen == "v7":
        # 64 MiB physical VMEM, ~3.2 TB/s HBM: big blocks to amortize the
        # ~0.35us/step overhead, but 2 streams x 2 buffers x block stays well
        # under 64 MiB.  parallel_split=2 -> split 'parallel' axes so both TCs
        # get work.
        return dict(ew_block=8 * _MIB, stats_block=8 * _MIB,
                    vmem_limit=48 * _MIB, parallel_split=2)
    if gen == "v6":
        return dict(ew_block=6 * _MIB, stats_block=12 * _MIB,
                    vmem_limit=64 * _MIB, parallel_split=1)
    if gen == "v5":
        # At ~0.82 TB/s, 2 MiB in+out blocks already amortize step overhead;
        # only the input-only stats pass benefits from a larger block.
        return dict(ew_block=2 * _MIB, stats_block=10 * _MIB,
                    vmem_limit=32 * _MIB, parallel_split=1)
    # Unknown generation / interpret mode: conservative, safe for 64 MiB VMEM.
    return dict(ew_block=2 * _MIB, stats_block=8 * _MIB,
                vmem_limit=32 * _MIB, parallel_split=1)


def _sublane_unit(dtype):
    # Native sublane packing: 8 rows (4-byte), 16 (2-byte), 32 (1-byte dtypes).
    return max(8, 32 // jnp.dtype(dtype).itemsize)


def _budget_itemsize(dtype):
    # Kernels upcast to f32 internally; budget blocks on the f32 working set so
    # sub-32-bit inputs don't blow the scoped-VMEM limit.
    return max(jnp.dtype(dtype).itemsize, 4)


def _pick_tile(dim, unit, budget_elems):
    """Largest multiple of `unit` <= min(dim, budget_elems) (full dim if tiny)."""
    if dim <= unit:
        return dim
    tiles = max(1, min(dim, budget_elems) // unit)
    return tiles * unit


def _cap_tile_for_split(dim, tile, unit, min_blocks):
    """Shrink `tile` so the axis has >= min_blocks grid blocks (TC sharding)."""
    if min_blocks <= 1 or dim <= unit:
        return tile
    cap = max(unit, (dim // min_blocks) // unit * unit)
    return min(tile, cap)


def _pick_lane_tile(length, budget_elems):
    """Lane (last-dim) tile.  Prefer a multiple-of-128 divisor of `length`
    (no tail masking) as long as it keeps >= half the budget; otherwise the
    largest multiple of 128 within budget (tail tile handled by masking)."""
    budget_elems = max(128, budget_elems)
    if length <= budget_elems:
        return length, False
    t_max = (budget_elems // 128) * 128
    t = t_max
    while t >= max(128, t_max // 2):
        if length % t == 0:
            return t, False
        t -= 128
    return t_max, (length % t_max) != 0


# ---------------------------------------------------------------------------
# Instance norm: fused per-row mean/var/normalize (no affine).
# ---------------------------------------------------------------------------
def _inorm_kernel(x_ref, o_ref, *, eps):
    x = x_ref[...].astype(jnp.float32)                    # (TR, L)
    mean = jnp.mean(x, axis=-1, keepdims=True)
    xc = x - mean
    var = jnp.mean(xc * xc, axis=-1, keepdims=True)       # biased variance
    o_ref[...] = (xc * lax.rsqrt(var + eps)).astype(o_ref.dtype)


def _instance_norm(x, eps=_EPS):
    N, C, H, W = x.shape
    R, L = N * C, H * W
    cfg = _budgets()
    unit = _sublane_unit(x.dtype)
    bsize = _budget_itemsize(x.dtype)

    # Whole-row fused path needs 2 streams x 2 buffers x (unit, L) at minimum.
    # If that does not comfortably fit the VMEM budget (large feature maps,
    # especially on v7x's 64 MiB VMEM), use the two-pass L-split reduction:
    # instance norm == batch norm over (1, N*C, L) channels, identity affine.
    if 4 * unit * L * bsize > (cfg["vmem_limit"] * 3) // 4:
        y3 = _batch_norm_ncl(x.reshape(1, R, L), None, None, eps, cfg)
        return y3.reshape(N, C, H, W)

    x2 = x.reshape(R, L)                                   # free view, contiguous
    tr = _pick_tile(R, unit, cfg["ew_block"] // (L * bsize))
    # v7x: make sure the single 'parallel' axis has >=4 blocks so both TCs run.
    tr = _cap_tile_for_split(R, tr, unit,
                             4 if cfg["parallel_split"] > 1 else 1)
    y2 = pl.pallas_call(
        functools.partial(_inorm_kernel, eps=eps),
        out_shape=jax.ShapeDtypeStruct((R, L), x.dtype),
        grid=(pl.cdiv(R, tr),),
        in_specs=[pl.BlockSpec((tr, L), lambda i: (i, 0))],
        out_specs=pl.BlockSpec((tr, L), lambda i: (i, 0)),
        compiler_params=pltpu.CompilerParams(
            dimension_semantics=("parallel",),
            vmem_limit_bytes=cfg["vmem_limit"],
        ),
    )(x2)
    return y2.reshape(N, C, H, W)


# ---------------------------------------------------------------------------
# Batch norm pass 1: per-channel (count, mean, M2) split reduction over (N, L).
# ---------------------------------------------------------------------------
def _bn_stats_kernel(x_ref, cnt_ref, mean_ref, m2_ref, *, hw, thw, mask_tail):
    n = pl.program_id(1)
    h = pl.program_id(2)

    @pl.when(jnp.logical_and(n == 0, h == 0))
    def _():
        cnt_ref[...] = jnp.zeros_like(cnt_ref)
        mean_ref[...] = jnp.zeros_like(mean_ref)
        m2_ref[...] = jnp.zeros_like(m2_ref)

    x = x_ref[0].astype(jnp.float32)                       # (TC, THW)

    def merge(m_b, m2_b, n_b):
        # Parallel-Welford merge into running (count, mean, M2) accumulators.
        n_a = cnt_ref[...]
        n_ab = n_a + n_b
        delta = m_b - mean_ref[...]
        mean_ref[...] = mean_ref[...] + delta * (n_b / n_ab)
        m2_ref[...] = m2_ref[...] + m2_b + (delta * delta) * (n_a * n_b / n_ab)
        cnt_ref[...] = n_ab

    def unmasked():
        n_b = jnp.float32(thw)
        m_b = jnp.sum(x, axis=-1, keepdims=True) / n_b
        d = x - m_b
        merge(m_b, jnp.sum(d * d, axis=-1, keepdims=True), n_b)

    if not mask_tail:
        unmasked()
    else:
        # Only the last lane tile has invalid (out-of-range) lanes; keep the
        # steady-state loop free of iota/where work.
        tail = hw % thw                                    # static, > 0 here
        is_last = h == pl.num_programs(2) - 1

        @pl.when(jnp.logical_not(is_last))
        def _():
            unmasked()

        @pl.when(is_last)
        def _():
            lane = lax.broadcasted_iota(jnp.int32, x.shape, 1)
            valid = lane < tail
            xm = jnp.where(valid, x, 0.0)
            n_b = jnp.float32(tail)
            m_b = jnp.sum(xm, axis=-1, keepdims=True) / n_b
            d = jnp.where(valid, xm - m_b, 0.0)
            merge(m_b, jnp.sum(d * d, axis=-1, keepdims=True), n_b)


# ---------------------------------------------------------------------------
# Batch norm pass 2: y = x * scale[c] + shift[c] in the native (N, C, L) layout.
# ---------------------------------------------------------------------------
def _bn_apply_kernel(x_ref, scale_ref, shift_ref, o_ref):
    x = x_ref[0].astype(jnp.float32)                       # (TC, THW)
    o_ref[0] = (x * scale_ref[...] + shift_ref[...]).astype(o_ref.dtype)


def _batch_norm_ncl(x3, weight, bias, eps, cfg):
    """Per-channel (axis 1) batch norm of x3 (N, C, L) with optional affine."""
    N, C, L = x3.shape
    unit = _sublane_unit(x3.dtype)
    bsize = _budget_itemsize(x3.dtype)

    # ---- pass 1: stats (input-only stream -> gets the big block budget) ----
    tc = _pick_tile(C, unit, 64)
    tc = _cap_tile_for_split(C, tc, unit, cfg["parallel_split"])
    thw, mask_tail = _pick_lane_tile(L, cfg["stats_block"] // (tc * bsize))
    grid1 = (pl.cdiv(C, tc), N, pl.cdiv(L, thw))

    # NOTE: if profiling still shows exposed DMA at step boundaries on v7x,
    # add pipeline_mode=pl.Buffered(3) to the x BlockSpec below (input-only
    # stream; accumulators are resident, so one extra buffer is cheap).
    stat_spec = pl.BlockSpec((tc, 1), lambda c, n, h: (c, 0))
    cnt_c, mean_c, m2_c = pl.pallas_call(
        functools.partial(_bn_stats_kernel, hw=L, thw=thw, mask_tail=mask_tail),
        out_shape=(
            jax.ShapeDtypeStruct((C, 1), jnp.float32),     # count
            jax.ShapeDtypeStruct((C, 1), jnp.float32),     # mean
            jax.ShapeDtypeStruct((C, 1), jnp.float32),     # M2
        ),
        grid=grid1,
        in_specs=[pl.BlockSpec((1, tc, thw), lambda c, n, h: (n, c, h))],
        out_specs=(stat_spec, stat_spec, stat_spec),
        compiler_params=pltpu.CompilerParams(
            dimension_semantics=("parallel", "arbitrary", "arbitrary"),
            vmem_limit_bytes=cfg["vmem_limit"],
        ),
    )(x3)

    # Fold mean/var/gamma/beta into per-channel scale & shift (tiny, f32).
    var_c = m2_c / cnt_c                                   # biased var (PyTorch)
    inv_c = lax.rsqrt(var_c + eps)
    if weight is None:
        scale = inv_c
        shift = -mean_c * inv_c
    else:
        gamma = weight.reshape(C, 1).astype(jnp.float32)
        beta = bias.reshape(C, 1).astype(jnp.float32)
        scale = gamma * inv_c
        shift = beta - mean_c * scale

    # ---- pass 2: elementwise normalize (in + out streams) ----
    thw2, _ = _pick_lane_tile(L, cfg["ew_block"] // (tc * bsize))
    grid2 = (pl.cdiv(C, tc), N, pl.cdiv(L, thw2))
    y3 = pl.pallas_call(
        _bn_apply_kernel,
        out_shape=jax.ShapeDtypeStruct((N, C, L), x3.dtype),
        grid=grid2,
        in_specs=[
            pl.BlockSpec((1, tc, thw2), lambda c, n, h: (n, c, h)),
            pl.BlockSpec((tc, 1), lambda c, n, h: (c, 0)),
            pl.BlockSpec((tc, 1), lambda c, n, h: (c, 0)),
        ],
        out_specs=pl.BlockSpec((1, tc, thw2), lambda c, n, h: (n, c, h)),
        compiler_params=pltpu.CompilerParams(
            dimension_semantics=("parallel", "parallel", "parallel"),
            vmem_limit_bytes=cfg["vmem_limit"],
        ),
    )(x3, scale, shift)
    return y3


def _batch_norm(x, weight, bias, eps=_EPS):
    # TODO(synk): running_mean/running_var buffer updates are training
    # bookkeeping, not part of the functional forward output; omitted.
    N, C, H, W = x.shape
    cfg = _budgets()
    y3 = _batch_norm_ncl(x.reshape(N, C, H * W), weight, bias, eps, cfg)
    return y3.reshape(N, C, H, W)


def norm2d_forward(x, norm_mode, weight=None, bias=None):
    """Forward pass of Norm2d.  x is NCHW (matching the PyTorch module)."""
    if norm_mode == "bnorm":
        return _batch_norm(x, weight, bias)
    elif norm_mode == "inorm":
        return _instance_norm(x)
    else:
        raise ValueError(f"unknown norm_mode: {norm_mode}")


def _ref_norm2d(x, norm_mode, weight=None, bias=None, eps=_EPS):
    xf = x.astype(jnp.float32)
    if norm_mode == "bnorm":
        mean = jnp.mean(xf, axis=(0, 2, 3), keepdims=True)
        var = jnp.mean((xf - mean) ** 2, axis=(0, 2, 3), keepdims=True)
        y = (xf - mean) / jnp.sqrt(var + eps)
        return (y * weight.reshape(1, -1, 1, 1)
                + bias.reshape(1, -1, 1, 1)).astype(x.dtype)
    else:
        mean = jnp.mean(xf, axis=(2, 3), keepdims=True)
        var = jnp.mean((xf - mean) ** 2, axis=(2, 3), keepdims=True)
        return ((xf - mean) / jnp.sqrt(var + eps)).astype(x.dtype)


if __name__ == "__main__":
    key = jax.random.PRNGKey(0)
    N, C, H, W = 2, 4, 16, 16
    x = jax.random.normal(key, (N, C, H, W), dtype=jnp.float32)

    # Deterministic BatchNorm2d affine params (PyTorch default init: 1 / 0).
    bn_weight = jnp.ones((C,), dtype=jnp.float32)
    bn_bias = jnp.zeros((C,), dtype=jnp.float32)

    norm_fn = jax.jit(norm2d_forward, static_argnames=("norm_mode",))
    y_bn = norm_fn(x, norm_mode="bnorm", weight=bn_weight, bias=bn_bias)
    y_in = norm_fn(x, norm_mode="inorm")
    jax.block_until_ready(y_bn)
    jax.block_until_ready(y_in)

    # Sanity check against plain-JAX references.
    ref_bn = _ref_norm2d(x, "bnorm", bn_weight, bn_bias)
    ref_in = _ref_norm2d(x, "inorm")
    assert jnp.max(jnp.abs(y_bn - ref_bn)) < 1e-4, "bnorm mismatch"
    assert jnp.max(jnp.abs(y_in - ref_in)) < 1e-4, "inorm mismatch"

    print("KERNEL_OK")
</pallas_src>

<mosaic_0001>
module attributes {stable_mosaic.version = 11 : i64} {
  func.func @_bn_stats_kernel(%arg0: i32, %arg1: i32, %arg2: i32, %arg3: memref<1x4x256xf32, #tpu.memory_space<vmem>>, %arg4: memref<4x1xf32, #tpu.memory_space<vmem>>, %arg5: memref<4x1xf32, #tpu.memory_space<vmem>>, %arg6: memref<4x1xf32, #tpu.memory_space<vmem>>) attributes {dimension_semantics = [#tpu.dimension_semantics<parallel>, #tpu.dimension_semantics<arbitrary>, #tpu.dimension_semantics<arbitrary>], iteration_bounds = array<i64: 1, 2, 1>, scalar_prefetch = 0 : i64, scratch_operands = 0 : i64, tpu.core_type = #tpu.core_type<tc>, window_params = [{transform_indices = @transform_0, window_bounds = array<i64: 1, 4, 256>}, {transform_indices = @transform_1, window_bounds = array<i64: 4, 1>}, {transform_indices = @transform_2, window_bounds = array<i64: 4, 1>}, {transform_indices = @transform_3, window_bounds = array<i64: 4, 1>}]} {
    %c0_i32 = arith.constant 0 : i32
    %0 = arith.cmpi eq, %arg1, %c0_i32 : i32
    %c0_i32_0 = arith.constant 0 : i32
    %1 = arith.cmpi eq, %arg2, %c0_i32_0 : i32
    %2 = arith.andi %0, %1 : i1
    %3 = arith.extui %2 : i1 to i32
    %c0_i32_1 = arith.constant 0 : i32
    %4 = arith.cmpi ne, %3, %c0_i32_1 : i32
    scf.if %4 {
      %cst_23 = arith.constant 0.000000e+00 : f32
      %37 = vector.broadcast %cst_23 : f32 to vector<4x1xf32>
      %c0_24 = arith.constant 0 : index
      %c0_25 = arith.constant 0 : index
      %38 = vector.load %arg4[%c0_24, %c0_25] : memref<4x1xf32, #tpu.memory_space<vmem>>, vector<4x1xf32>
      tpu.vector_store %arg4[%c0_24, %c0_25], %37 {strides = array<i32>} : memref<4x1xf32, #tpu.memory_space<vmem>>, vector<4x1xf32>,
      %cst_26 = arith.constant 0.000000e+00 : f32
      %39 = vector.broadcast %cst_26 : f32 to vector<4x1xf32>
      %c0_27 = arith.constant 0 : index
      %c0_28 = arith.constant 0 : index
      %40 = vector.load %arg5[%c0_27, %c0_28] : memref<4x1xf32, #tpu.memory_space<vmem>>, vector<4x1xf32>
      tpu.vector_store %arg5[%c0_27, %c0_28], %39 {strides = array<i32>} : memref<4x1xf32, #tpu.memory_space<vmem>>, vector<4x1xf32>,
      %cst_29 = arith.constant 0.000000e+00 : f32
      %41 = vector.broadcast %cst_29 : f32 to vector<4x1xf32>
      %c0_30 = arith.constant 0 : index
      %c0_31 = arith.constant 0 : index
      %42 = vector.load %arg6[%c0_30, %c0_31] : memref<4x1xf32, #tpu.memory_space<vmem>>, vector<4x1xf32>
      tpu.vector_store %arg6[%c0_30, %c0_31], %41 {strides = array<i32>} : memref<4x1xf32, #tpu.memory_space<vmem>>, vector<4x1xf32>,
    } else {
    }
    %c0 = arith.constant 0 : index
    %c0_2 = arith.constant 0 : index
    %c0_3 = arith.constant 0 : index
    %5 = vector.load %arg3[%c0, %c0_2, %c0_3] : memref<1x4x256xf32, #tpu.memory_space<vmem>>, vector<1x4x256xf32>
    %6 = vector.shape_cast %5 : vector<1x4x256xf32> to vector<4x256xf32>
    %cst = arith.constant dense<0.000000e+00> : vector<4xf32>
    %7 = vector.multi_reduction <add>, %6, %cst [1] : vector<4x256xf32> to vector<4xf32>
    %8 = vector.shape_cast %7 : vector<4xf32> to vector<4x1xf32>
    %cst_4 = arith.constant 2.560000e+02 : f32
    %9 = vector.broadcast %cst_4 : f32 to vector<4x1xf32>
    %10 = arith.divf %8, %9 : vector<4x1xf32>
    %11 = vector.broadcast %10 : vector<4x1xf32> to vector<4x256xf32>
    %12 = arith.subf %6, %11 : vector<4x256xf32>
    %13 = arith.mulf %12, %12 : vector<4x256xf32>
    %cst_5 = arith.constant dense<0.000000e+00> : vector<4xf32>
    %14 = vector.multi_reduction <add>, %13, %cst_5 [1] : vector<4x256xf32> to vector<4xf32>
    %15 = vector.shape_cast %14 : vector<4xf32> to vector<4x1xf32>
    %c0_6 = arith.constant 0 : index
    %c0_7 = arith.constant 0 : index
    %16 = vector.load %arg4[%c0_6, %c0_7] : memref<4x1xf32, #tpu.memory_space<vmem>>, vector<4x1xf32>
    %cst_8 = arith.constant 2.560000e+02 : f32
    %17 = vector.broadcast %cst_8 : f32 to vector<4x1xf32>
    %18 = arith.addf %16, %17 : vector<4x1xf32>
    %c0_9 = arith.constant 0 : index
    %c0_10 = arith.constant 0 : index
    %19 = vector.load %arg5[%c0_9, %c0_10] : memref<4x1xf32, #tpu.memory_space<vmem>>, vector<4x1xf32>
    %20 = arith.subf %10, %19 : vector<4x1xf32>
    %c0_11 = arith.constant 0 : index
    %c0_12 = arith.constant 0 : index
    %21 = vector.load %arg5[%c0_11, %c0_12] : memref<4x1xf32, #tpu.memory_space<vmem>>, vector<4x1xf32>
    %cst_13 = arith.constant 2.560000e+02 : f32
    %22 = vector.broadcast %cst_13 : f32 to vector<4x1xf32>
    %23 = arith.divf %22, %18 : vector<4x1xf32>
    %24 = arith.mulf %20, %23 : vector<4x1xf32>
    %25 = arith.addf %21, %24 : vector<4x1xf32>
    %c0_14 = arith.constant 0 : index
    %c0_15 = arith.constant 0 : index
    %26 = vector.load %arg5[%c0_14, %c0_15] : memref<4x1xf32, #tpu.memory_space<vmem>>, vector<4x1xf32>
    tpu.vector_store %arg5[%c0_14, %c0_15], %25 {strides = array<i32>} : memref<4x1xf32, #tpu.memory_space<vmem>>, vector<4x1xf32>,
    %c0_16 = arith.constant 0 : index
    %c0_17 = arith.constant 0 : index
    %27 = vector.load %arg6[%c0_16, %c0_17] : memref<4x1xf32, #tpu.memory_space<vmem>>, vector<4x1xf32>
    %28 = arith.addf %27, %15 : vector<4x1xf32>
    %29 = arith.mulf %20, %20 : vector<4x1xf32>
    %cst_18 = arith.constant 2.560000e+02 : f32
    %30 = vector.broadcast %cst_18 : f32 to vector<4x1xf32>
    %31 = arith.mulf %16, %30 : vector<4x1xf32>
    %32 = arith.divf %31, %18 : vector<4x1xf32>
    %33 = arith.mulf %29, %32 : vector<4x1xf32>
    %34 = arith.addf %28, %33 : vector<4x1xf32>
    %c0_19 = arith.constant 0 : index
    %c0_20 = arith.constant 0 : index
    %35 = vector.load %arg6[%c0_19, %c0_20] : memref<4x1xf32, #tpu.memory_space<vmem>>, vector<4x1xf32>
    tpu.vector_store %arg6[%c0_19, %c0_20], %34 {strides = array<i32>} : memref<4x1xf32, #tpu.memory_space<vmem>>, vector<4x1xf32>,
    %c0_21 = arith.constant 0 : index
    %c0_22 = arith.constant 0 : index
    %36 = vector.load %arg4[%c0_21, %c0_22] : memref<4x1xf32, #tpu.memory_space<vmem>>, vector<4x1xf32>
    tpu.vector_store %arg4[%c0_21, %c0_22], %18 {strides = array<i32>} : memref<4x1xf32, #tpu.memory_space<vmem>>, vector<4x1xf32>,
    return
  }
  func.func @transform_0(%arg0: i32, %arg1: i32, %arg2: i32) -> (i32, i32, i32) {
    %c0_i32 = arith.constant 0 : i32
    return %arg1, %arg0, %arg2 : i32, i32, i32
  }
  func.func @transform_1(%arg0: i32, %arg1: i32, %arg2: i32) -> (i32, i32) {
    %c0_i32 = arith.constant 0 : i32
    %c0_i32_0 = arith.constant 0 : i32
    return %arg0, %c0_i32 : i32, i32
  }
  func.func @transform_2(%arg0: i32, %arg1: i32, %arg2: i32) -> (i32, i32) {
    %c0_i32 = arith.constant 0 : i32
    %c0_i32_0 = arith.constant 0 : i32
    return %arg0, %c0_i32 : i32, i32
  }
  func.func @transform_3(%arg0: i32, %arg1: i32, %arg2: i32) -> (i32, i32) {
    %c0_i32 = arith.constant 0 : i32
    %c0_i32_0 = arith.constant 0 : i32
    return %arg0, %c0_i32 : i32, i32
  }
}

module attributes {stable_mosaic.version = 11 : i64} {
  func.func @_bn_apply_kernel(%arg0: i32, %arg1: i32, %arg2: i32, %arg3: memref<1x4x256xf32, #tpu.memory_space<vmem>>, %arg4: memref<4x1xf32, #tpu.memory_space<vmem>>, %arg5: memref<4x1xf32, #tpu.memory_space<vmem>>, %arg6: memref<1x4x256xf32, #tpu.memory_space<vmem>>) attributes {dimension_semantics = [#tpu.dimension_semantics<parallel>, #tpu.dimension_semantics<parallel>, #tpu.dimension_semantics<parallel>], iteration_bounds = array<i64: 1, 2, 1>, scalar_prefetch = 0 : i64, scratch_operands = 0 : i64, tpu.core_type = #tpu.core_type<tc>, window_params = [{transform_indices = @transform_0, window_bounds = array<i64: 1, 4, 256>}, {transform_indices = @transform_1, window_bounds = array<i64: 4, 1>}, {transform_indices = @transform_2, window_bounds = array<i64: 4, 1>}, {transform_indices = @transform_3, window_bounds = array<i64: 1, 4, 256>}]} {
    %c0 = arith.constant 0 : index
    %c0_0 = arith.constant 0 : index
    %c0_1 = arith.constant 0 : index
    %0 = vector.load %arg3[%c0, %c0_0, %c0_1] : memref<1x4x256xf32, #tpu.memory_space<vmem>>, vector<1x4x256xf32>
    %1 = vector.shape_cast %0 : vector<1x4x256xf32> to vector<4x256xf32>
    %c0_2 = arith.constant 0 : index
    %c0_3 = arith.constant 0 : index
    %2 = vector.load %arg4[%c0_2, %c0_3] : memref<4x1xf32, #tpu.memory_space<vmem>>, vector<4x1xf32>
    %3 = vector.broadcast %2 : vector<4x1xf32> to vector<4x256xf32>
    %4 = arith.mulf %1, %3 : vector<4x256xf32>
    %c0_4 = arith.constant 0 : index
    %c0_5 = arith.constant 0 : index
    %5 = vector.load %arg5[%c0_4, %c0_5] : memref<4x1xf32, #tpu.memory_space<vmem>>, vector<4x1xf32>
    %6 = vector.broadcast %5 : vector<4x1xf32> to vector<4x256xf32>
    %7 = arith.addf %4, %6 : vector<4x256xf32>
    %c0_6 = arith.constant 0 : index
    %c0_7 = arith.constant 0 : index
    %c0_8 = arith.constant 0 : index
    %8 = vector.load %arg6[%c0_6, %c0_7, %c0_8] : memref<1x4x256xf32, #tpu.memory_space<vmem>>, vector<1x4x256xf32>
    %9 = vector.shape_cast %8 : vector<1x4x256xf32> to vector<4x256xf32>
    %10 = vector.shape_cast %7 : vector<4x256xf32> to vector<1x4x256xf32>
    tpu.vector_store %arg6[%c0_6, %c0_7, %c0_8], %10 {strides = array<i32>} : memref<1x4x256xf32, #tpu.memory_space<vmem>>, vector<1x4x256xf32>,
    return
  }
  func.func @transform_0(%arg0: i32, %arg1: i32, %arg2: i32) -> (i32, i32, i32) {
    %c0_i32 = arith.constant 0 : i32
    return %arg1, %arg0, %arg2 : i32, i32, i32
  }
  func.func @transform_1(%arg0: i32, %arg1: i32, %arg2: i32) -> (i32, i32) {
    %c0_i32 = arith.constant 0 : i32
    %c0_i32_0 = arith.constant 0 : i32
    return %arg0, %c0_i32 : i32, i32
  }
  func.func @transform_2(%arg0: i32, %arg1: i32, %arg2: i32) -> (i32, i32) {
    %c0_i32 = arith.constant 0 : i32
    %c0_i32_0 = arith.constant 0 : i32
    return %arg0, %c0_i32 : i32, i32
  }
  func.func @transform_3(%arg0: i32, %arg1: i32, %arg2: i32) -> (i32, i32, i32) {
    %c0_i32 = arith.constant 0 : i32
    return %arg1, %arg0, %arg2 : i32, i32, i32
  }
}

</mosaic_0001>

<bundles_post_ra>
// kernel: norm2d_forward.3
= control target key start
LH: loop header
LB: loop body
LE: loop exit
PB: predicated region body
PF: predicated region fallthrough
CT: control target
= control target key end

     0   :  { %s535_s12 = smov 0   ;;  %s537_s13 = smov 0   ;;  %s574_s0 = inlined_call_operand.vmem [shape: f32[2,4,256], index: 0, kind: input, shape index: {}]   ;;  %s575_s1 = inlined_call_operand.vmem [shape: f32[4,1], index: 1, kind: input, shape index: {}]   ;;  %s576_s2 = inlined_call_operand.vmem [shape: f32[4,1], index: 2, kind: input, shape index: {}]   ;;  %s577_s3 = inlined_call_operand.vmem [shape: f32[2,4,256], index: 3, kind: output, shape index: {}]  }
   0x1   :  { %s539_s14 = smov 0  }
   0x2 LB: > { %s28_s15 = sadd.s32 1, %s507_s13  ;;  %p453_p0 = scmp.ge.s32.totalorder %s511_s14, 1  ;;  %s511_s14 = sphi %s539_s14, %s13_s14   ;;  %s507_s13 = sphi %s537_s13, %s579_s13   ;;  %s503_s12 = sphi %s535_s12, %s578_s12  }
   0x3   : > { %p30_p1 = scmp.ge.s32.totalorder %s28_s15, 2  ;;  %p191_p2 = scmp.lt.s32.totalorder %s511_s14, 3 }
   0x5   : > { %s581_s15 = smov (%p30_p1, %s28_s15), 0  ;;  %p192_p3 = pnand %p453_p0, %p191_p2 }
   0x6   : > { %v276_v0 = vld [vmem:[%s575_s1] sm:$0xf] (!%p192_p3)  ;;  %v513_v1 = vmov (!%p192_p3), 0   ;;  %p240_p4 = scmp.lt.s32.totalorder (!%p192_p3), %s503_s12, 1  ;;  %v514_v3 = vmov (!%p192_p3), 839922192   ;;  %v284_v5 = vlaneseq (!%p192_p3) }
   0x7   : > { %195 = sbr.rel (%p192_p3) target bundleno = 145 (0x91), region = 32  ;;  %488 = vset.pattern.permute.xlu0 (!%p192_p3), %v513_v1  ;;  %v290_v2 = vld [vmem:[%s576_s2] sm:$0xf] (!%p192_p3)  ;;  %v282_v4 = vunpack.c.l.s4 (!%p192_p3), %v514_v3 }
   0x8   : > { %279 = vperm.xlu0 (!%p192_p3), %488, %v276_v0   ;;  %v285_v7 = vshrl.u32 (!%p192_p3), %v284_v5, 7 }
   0x9   : > { %v283_v6 = vunpack.c.0.s8 (!%p192_p3), %v282_v4 }
   0xb   : > { %v286_v8 = vsub.s32 (!%p192_p3), %v283_v6, %v285_v7 }
   0xc   : > { %293 = vperm.xlu0 (!%p192_p3), %488, %v290_v2  }
   0xe   : > { %s583_s12 = smov (!%p240_p4, %s503_s12), 1 }
   0xf   : > { %s460_s20 = sshll.u32 %s583_s12, 3 }
  0x10   : > { %s251_s23 = scalar_lea.vmem %s574_s0, %s460_s20  ;;  %s273_s26 = scalar_lea.vmem %s577_s3, %s460_s20 }
  0x11   : > { %v275_v11 = vld [vmem:[%s251_s23] sm:$0xff] }
  0x87   : > { %v280_v9 = vpop.permute.xlu0 %279 }
  0x88   : > { %v287_v10 = vrot.slane %v280_v9, %v286_v8 }
  0x8a   : > { %v289_v13 = vmul.f32 %v287_v10, %v275_v11 }
  0x8b   : > { %v294_v12 = vpop.permute.xlu0 %293 }
  0x8c   : > { %v301_v14 = vrot.slane %v294_v12, %v286_v8 }
  0x8e   : > { %v303_v15 = vadd.f32 %v301_v14, %v289_v13 }
  0x90   : > { %304 = vst [vmem:[%s273_s26] sm:$0xff] %v303_v15 }
  0x91 PF: > { %s13_s14 = sadd.s32 1, %s511_s14   ;;  %s578_s12 = smov %s507_s13 }
  0x92   : > { %p10_p5 = scmp.ge.s32.totalorder %s13_s14, 4   ;;  %s579_s13 = smov %s581_s15 }
  0x94   :  { %12 = sbr.rel (!%p10_p5) target bundleno = 2 (0x2), region = 68 }

// kernel: norm2d_forward.2
= control target key start
LH: loop header
LB: loop body
LE: loop exit
PB: predicated region body
PF: predicated region fallthrough
CT: control target
= control target key end

     0   :  { %s518_s12 = smov 0   ;;  %s520_s13 = smov 0   ;;  %s582_s0 = inlined_call_operand.vmem [shape: f32[2,4,256], index: 0, kind: input, shape index: {}]   ;;  %s583_s1 = inlined_call_operand.vmem [shape: f32[4,1], index: 1, kind: output, shape index: {0}]   ;;  %s584_s2 = inlined_call_operand.vmem [shape: f32[4,1], index: 2, kind: output, shape index: {1}]   ;;  %s585_s3 = inlined_call_operand.vmem [shape: f32[4,1], index: 3, kind: output, shape index: {2}]  }
   0x1   :  { %s522_s14 = smov 0  }
   0x2 LB: > { %s29_s15 = sadd.s32 1, %s490_s13  ;;  %p432_p0 = scmp.ge.s32.totalorder %s494_s14, 1  ;;  %s494_s14 = sphi %s522_s14, %s14_s14   ;;  %s490_s13 = sphi %s520_s13, %s587_s13   ;;  %s486_s12 = sphi %s518_s12, %s586_s12  }
   0x3   : > { %p31_p1 = scmp.ge.s32.totalorder %s29_s15, 2  ;;  %p174_p2 = scmp.lt.s32.totalorder %s494_s14, 3 }
   0x5   : > { %s589_s15 = smov (%p31_p1, %s29_s15), 0  ;;  %p175_p3 = pnand %p432_p0, %p174_p2 }
   0x6   : > { %p214_p4 = scmp.lt.s32.totalorder (!%p175_p3), %s486_s12, 1  ;;  %p239_p5 = scmp.eq.s32.totalorder (!%p175_p3), %s486_s12, 0 }
   0x7   : > { %178 = sbr.rel (%p175_p3) target bundleno = 329 (0x149), region = 24 }
   0xe   : > { %s591_s12 = smov (!%p214_p4, %s486_s12), 1  ;;  %244 = sbr.rel (!%p239_p5) target bundleno = 21 (0x15), region = 28 }
   0xf   : > { %s441_s16 = sshll.u32 %s591_s12, 3  ;;  %vm245_vm0 = vcmask (%p239_p5), 3072   ;;  %v496_v0 = vmov (%p239_p5), 0.0  }
  0x10   : > { %s225_s19 = scalar_lea.vmem %s582_s0, %s441_s16  ;;  %246 = vst.msk [vmem:[%s583_s1] sm:$0xf] (%p239_p5), %vm245_vm0, %v496_v0  ;;  %247 = vst.msk [vmem:[%s584_s2] sm:$0xf] (%p239_p5), %vm245_vm0, %v496_v0 }
  0x11   : > { %248 = vst.msk [vmem:[%s585_s3] sm:$0xf] (%p239_p5), %vm245_vm0, %v496_v0 }
  0x15 PF: > { %v249_v1 = vld [vmem:[%s225_s19] sm:$0xff]  ;;  %vm253_vm1 = vcmask 1043456   ;;  %vm288_vm2 = vcmask 3072   ;;  %v497_v11 = vmov 839922192   ;;  %v265_v13 = vlaneseq }
  0x16   : > { %v251_v2 = vcombine.high %v249_v1, %v249_v1  ;;  %v254_v3 = vsel %vm253_vm1, %v249_v1, 0.0  ;;  %v263_v12 = vunpack.c.l.s4 %v497_v11 }
  0x17   : > { %v280_v6 = vld [vmem:[%s583_s1] sm:$0xf]  ;;  %v266_v15 = vshrl.u32 %v265_v13, 7 }
  0x18   : > { %v255_v4 = vsel %vm253_vm1, %v251_v2, 0.0  ;;  %v281_v7 = vadd.f32 256.0, %v280_v6  ;;  %v293_v8 = vmul.f32 256.0, %v280_v6  ;;  %v264_v14 = vunpack.c.0.s8 %v263_v12  ;;  %v282_v17 = vld [vmem:[%s584_s2] sm:$0xf] }
  0x19   : > { %v256_v5 = vadd.f32 %v255_v4, %v254_v3  ;;  %v290_v33 = vld [vmem:[%s585_s3] sm:$0xf] }
  0x1a   : > { %470 = vrcp.f32 %v281_v7  ;;  %298 = vst.msk [vmem:[%s583_s1] sm:$0xf] %vm288_vm2, %v281_v7  ;;  %v267_v16 = vsub.s32 %v264_v14, %v266_v15 }
  0x1b   : > { %257 = vadd.xlane.f32.xlu0 %v256_v5 }
  0x24   : > { %v471_v9 = vpop.eup %470 }
  0x25   : > { %v294_v10 = vmul.f32 %v471_v9, %v293_v8  ;;  %v285_v19 = vmul.f32 256.0, %v471_v9 }
  0xa8   : > { %v258_v18 = vpop.xlane.xlu0 %257 }
  0xa9   : > { %v260_v20 = vmul.f32 0.00390625, %v258_v18 }
  0xab   : > { %v268_v21 = vrot.slane %v260_v20, %v267_v16  ;;  %v283_v22 = vsub.f32 %v260_v20, %v282_v17 }
  0xad   : > { %v270_v23 = vsub.f32 %v249_v1, %v268_v21  ;;  %v286_v24 = vmul.f32 %v285_v19, %v283_v22  ;;  %v292_v25 = vmul.f32 %v283_v22, %v283_v22 }
  0xaf   : > { %v287_v26 = vadd.f32 %v286_v24, %v282_v17  ;;  %v271_v27 = vmul.f32 %v270_v23, %v270_v23  ;;  %v295_v28 = vmul.f32 %v294_v10, %v292_v25 }
  0xb1   : > { %v273_v29 = vcombine.high %v271_v27, %v271_v27  ;;  %289 = vst.msk [vmem:[%s584_s2] sm:$0xf] %vm288_vm2, %v287_v26  ;;  %v275_v30 = vsel %vm253_vm1, %v271_v27, 0.0 }
  0xb3   : > { %v276_v31 = vsel %vm253_vm1, %v273_v29, 0.0 }
  0xb4   : > { %v277_v32 = vadd.f32 %v276_v31, %v275_v30 }
  0xb6   : > { %278 = vadd.xlane.f32.xlu0 %v277_v32 }
 0x143   : > { %v279_v34 = vpop.xlane.xlu0 %278 }
 0x144   : > { %v291_v35 = vadd.f32 %v290_v33, %v279_v34 }
 0x146   : > { %v296_v36 = vadd.f32 %v295_v28, %v291_v35 }
 0x148   : > { %297 = vst.msk [vmem:[%s585_s3] sm:$0xf] %vm288_vm2, %v296_v36 }
 0x149 PF: > { %s14_s14 = sadd.s32 1, %s494_s14   ;;  %s586_s12 = smov %s490_s13 }
 0x14a   : > { %p11_p6 = scmp.ge.s32.totalorder %s14_s14, 4   ;;  %s587_s13 = smov %s589_s15 }
 0x14c   :  { %13 = sbr.rel (!%p11_p6) target bundleno = 2 (0x2), region = 82 }

</bundles_post_ra>
